<compile_context>
chip_gen: v5e
topology: v5e:2x2
jax: 0.10.0
libtpu: 0.0.40
codegen_flags: <defaults>
</compile_context>

<pallas_src>
import functools

import jax
import jax.numpy as jnp
from jax.experimental import pallas as pl
from jax.experimental.pallas import tpu as pltpu

# Tile targets. bf16 weight tile = TK*TN*2 bytes (1 MiB at 512x1024), double
# buffered -> comfortably inside the VMEM budget on v5e / v6e / v7x (64 MiB).
TN_TARGET = 1024                       # vocab (lane) tile
TK_TARGET = 512                        # hidden (reduction) tile
VMEM_LIMIT_BYTES = 32 * 1024 * 1024    # explicit; safe on v7x (64 MiB physical)


def _round_up(x, m):
    return (x + m - 1) // m * m


# ----------------------------- Pallas kernels ------------------------------ #

def _resblock_chain_kernel(x_ref, w_ref, b_ref, h_ref):
    """One Medusa head's full ResBlock chain with the hidden kept resident.

    x_ref: (B, H) bf16          (same block every grid step -> stays resident)
    w_ref: (1, L, H, H) bf16    (this head's stacked ResBlock weights)
    b_ref: (1, L, 1, H) f32
    h_ref: (1, B, H) bf16       (per-head hidden fed to the projection kernel)
    """
    h = x_ref[...].astype(jnp.float32)
    n_layers = w_ref.shape[1]
    for l in range(n_layers):                          # static unroll, L is small
        z = jnp.dot(h.astype(jnp.bfloat16), w_ref[0, l],
                    preferred_element_type=jnp.float32) + b_ref[0, l]
        h = h + z * jax.nn.sigmoid(z)                  # x + SiLU(linear(x)), in f32
    h_ref[0] = h.astype(h_ref.dtype)
    # TODO(synk): for very large H (>~4k on v7x's 64 MiB VMEM) the per-head
    # (L, H, H) weight blocks should themselves be K-tiled instead of being
    # fetched whole.


def _proj_kernel(x_ref, w_ref, o_ref, acc_ref):
    """Fused projection: out[p] = xs[p] @ ws[p], K-tiled with f32 accumulator.

    grid = (P, V/TN, H/TK), reduction axis last.
    x_ref: (1, B, TK) bf16;  w_ref: (1, TK, TN) bf16;
    o_ref: (1, B, TN) f32;   acc_ref: (B, TN) f32 VMEM scratch.
    """
    k = pl.program_id(2)

    @pl.when(k == 0)
    def _():
        acc_ref[...] = jnp.zeros_like(acc_ref)

    acc_ref[...] += jnp.dot(x_ref[0], w_ref[0],
                            preferred_element_type=jnp.float32)

    @pl.when(k == pl.num_programs(2) - 1)
    def _():
        o_ref[0] = acc_ref[...].astype(o_ref.dtype)


# ------------------------------ Pallas wrappers ----------------------------- #

def _resblock_chains(x_p, rb_w, rb_b):
    """x_p:[B,H] bf16, rb_w:[n_heads,L,H,H] bf16, rb_b:[n_heads,L,1,H] f32
    -> [n_heads, B, H] bf16 (per-head hidden after the ResBlock chain)."""
    n_heads, n_layers, H_pad, _ = rb_w.shape
    B_pad = x_p.shape[0]
    if n_layers == 0:
        return jnp.broadcast_to(x_p[None], (n_heads, B_pad, H_pad))
    return pl.pallas_call(
        _resblock_chain_kernel,
        out_shape=jax.ShapeDtypeStruct((n_heads, B_pad, H_pad), jnp.bfloat16),
        grid_spec=pltpu.PrefetchScalarGridSpec(
            num_scalar_prefetch=0,
            grid=(n_heads,),
            in_specs=[
                pl.BlockSpec((B_pad, H_pad), lambda p: (0, 0)),
                pl.BlockSpec((1, n_layers, H_pad, H_pad), lambda p: (p, 0, 0, 0)),
                pl.BlockSpec((1, n_layers, 1, H_pad), lambda p: (p, 0, 0, 0)),
            ],
            out_specs=pl.BlockSpec((1, B_pad, H_pad), lambda p: (p, 0, 0)),
        ),
        compiler_params=pltpu.CompilerParams(
            dimension_semantics=("parallel",),
            vmem_limit_bytes=VMEM_LIMIT_BYTES,
        ),
    )(x_p, rb_w, rb_b)


def _projection(xs, ws):
    """xs:[P,B,H] bf16, ws:[P,H,V] bf16 -> [P,B,V] f32 (one pipelined weight stream)."""
    P, B_pad, H_pad = xs.shape
    V_pad = ws.shape[2]
    TK = min(TK_TARGET, H_pad)
    TN = min(TN_TARGET, V_pad)
    nk = H_pad // TK
    nj = V_pad // TN
    flops = 2 * P * B_pad * H_pad * V_pad
    bytes_accessed = (ws.size * ws.dtype.itemsize
                      + xs.size * xs.dtype.itemsize
                      + P * B_pad * V_pad * 4)
    return pl.pallas_call(
        _proj_kernel,
        out_shape=jax.ShapeDtypeStruct((P, B_pad, V_pad), jnp.float32),
        grid_spec=pltpu.PrefetchScalarGridSpec(
            num_scalar_prefetch=0,
            grid=(P, nj, nk),
            in_specs=[
                pl.BlockSpec((1, B_pad, TK), lambda p, j, k: (p, 0, k)),
                pl.BlockSpec((1, TK, TN), lambda p, j, k: (p, k, j)),
            ],
            out_specs=pl.BlockSpec((1, B_pad, TN), lambda p, j, k: (p, 0, j)),
            scratch_shapes=[pltpu.VMEM((B_pad, TN), jnp.float32)],
        ),
        compiler_params=pltpu.CompilerParams(
            dimension_semantics=("parallel", "parallel", "arbitrary"),
            vmem_limit_bytes=VMEM_LIMIT_BYTES,
        ),
        cost_estimate=pl.CostEstimate(flops=flops, transcendentals=0,
                                      bytes_accessed=bytes_accessed),
    )(xs, ws)


# ------------------------------ Weight packing ------------------------------ #

def pack_medusa_weights(lm_head_w, medusa_heads):
    """One-time host-side pack: pad to tile-friendly shapes, cast to bf16, stack.

    Returns:
      proj_w: [1 + n_heads, H_pad, V_pad] bf16   (lm_head, then each head's out)
      rb_w:   [n_heads, L, H_pad, H_pad] bf16
      rb_b:   [n_heads, L, 1, H_pad]     f32
    """
    H, V = lm_head_w.shape
    n_heads = len(medusa_heads)
    n_layers = len(medusa_heads[0]["blocks"]) if n_heads else 0

    TK = min(TK_TARGET, _round_up(H, 128))
    TN = min(TN_TARGET, _round_up(V, 128))
    H_pad = _round_up(H, TK)
    V_pad = _round_up(V, TN)

    def pad2(w, r, c):
        return jnp.pad(w, ((0, r - w.shape[0]), (0, c - w.shape[1])))

    proj = [pad2(lm_head_w, H_pad, V_pad)]
    rbw, rbb = [], []
    for head in medusa_heads:
        proj.append(pad2(head["out"], H_pad, V_pad))
        ws = [pad2(w, H_pad, H_pad) for (w, _) in head["blocks"]]
        bs = [pad2(b, 1, H_pad) for (_, b) in head["blocks"]]
        rbw.append(jnp.stack(ws) if ws
                   else jnp.zeros((0, H_pad, H_pad), jnp.float32))
        rbb.append(jnp.stack(bs) if bs
                   else jnp.zeros((0, 1, H_pad), jnp.float32))

    proj_w = jnp.stack(proj).astype(jnp.bfloat16)
    if n_heads:
        rb_w = jnp.stack(rbw).astype(jnp.bfloat16)
        rb_b = jnp.stack(rbb).astype(jnp.float32)
    else:
        rb_w = jnp.zeros((0, n_layers, H_pad, H_pad), jnp.bfloat16)
        rb_b = jnp.zeros((0, n_layers, 1, H_pad), jnp.float32)
    return proj_w, rb_w, rb_b


# ------------------------------ Model forward ------------------------------- #

@functools.partial(jax.jit, static_argnames=("vocab_size",))
def medusa_head_v1_forward(x, proj_w, rb_w, rb_b, *, vocab_size):
    """Returns (logits [B, V], speculative_logits [B, n_heads, V] or None)."""
    B, H = x.shape
    P, H_pad, V_pad = proj_w.shape
    n_heads = P - 1

    B_pad = _round_up(B, 16)  # sublane-friendly for bf16 activations
    x_p = jnp.pad(x, ((0, B_pad - B), (0, H_pad - H))).astype(jnp.bfloat16)

    if B > 128 or n_heads == 0:
        out = _projection(x_p[None], proj_w[0:1])            # lm_head only
        return out[0, :B, :vocab_size], None

    h_heads = _resblock_chains(x_p, rb_w, rb_b)              # [n_heads, B_pad, H_pad]
    xs = jnp.concatenate([x_p[None], h_heads], axis=0)       # [P, B_pad, H_pad]
    out = _projection(xs, proj_w)                            # [P, B_pad, V_pad]

    logits = out[0, :B, :vocab_size]
    speculative_logits = jnp.swapaxes(out[1:, :B, :vocab_size], 0, 1)
    return logits, speculative_logits


# --------------------------------- Reference -------------------------------- #

def _reference_forward(x, lm_head_w, medusa_heads):
    # Emulates the kernel's bf16 MXU inputs (weights + activations) so the
    # comparison is apples-to-apples; accumulation / SiLU stay in f32.
    bf = lambda a: a.astype(jnp.bfloat16).astype(jnp.float32)
    logits = bf(x) @ bf(lm_head_w)
    heads = []
    for head in medusa_heads:
        h = x.astype(jnp.float32)
        for w, b in head["blocks"]:
            z = bf(h) @ bf(w) + b[0]
            h = h + z * jax.nn.sigmoid(z)
        heads.append(bf(h) @ bf(head["out"]))
    if not heads:
        return logits, None
    return logits, jnp.stack(heads, axis=1)


# ----------------------------------- Main ------------------------------------ #

if __name__ == "__main__":
    B = 8          # tokens (<= 128 -> speculative path active)
    H = 64         # hidden size
    V = 256        # vocab size
    N_HEADS = 3    # get_speculate()
    N_LAYERS = 2   # medusa_num_layers

    key = jax.random.PRNGKey(0)
    k_x, k_lm, k_heads = jax.random.split(key, 3)

    x = jax.random.normal(k_x, (B, H), dtype=jnp.float32)
    lm_head_w = 0.02 * jax.random.normal(k_lm, (H, V), dtype=jnp.float32)

    medusa_heads = []
    hk = k_heads
    for _ in range(N_HEADS):
        blocks = []
        for _ in range(N_LAYERS):
            hk, kw, kb = jax.random.split(hk, 3)
            w = 0.02 * jax.random.normal(kw, (H, H), dtype=jnp.float32)
            b = 0.02 * jax.random.normal(kb, (1, H), dtype=jnp.float32)
            blocks.append((w, b))
        hk, ko = jax.random.split(hk)
        out_w = 0.02 * jax.random.normal(ko, (H, V), dtype=jnp.float32)
        medusa_heads.append({"blocks": blocks, "out": out_w})

    proj_w, rb_w, rb_b = pack_medusa_weights(lm_head_w, medusa_heads)

    logits, spec_logits = medusa_head_v1_forward(x, proj_w, rb_w, rb_b,
                                                 vocab_size=V)
    logits = jax.block_until_ready(logits)
    spec_logits = jax.block_until_ready(spec_logits)

    ref_logits, ref_spec = _reference_forward(x, lm_head_w, medusa_heads)

    assert logits.shape == (B, V)
    assert spec_logits.shape == (B, N_HEADS, V)
    assert jnp.allclose(logits, ref_logits, atol=1e-2, rtol=1e-2)
    assert jnp.allclose(spec_logits, ref_spec, atol=1e-2, rtol=1e-2)

    # B > 128 path: lm_head only, speculative_logits must be None.
    xb = jax.random.normal(jax.random.PRNGKey(1), (130, H), dtype=jnp.float32)
    big_logits, big_spec = medusa_head_v1_forward(xb, proj_w, rb_w, rb_b,
                                                  vocab_size=V)
    big_logits = jax.block_until_ready(big_logits)
    assert big_spec is None
    assert big_logits.shape == (130, V)
    ref_big = (xb.astype(jnp.bfloat16).astype(jnp.float32)
               @ lm_head_w.astype(jnp.bfloat16).astype(jnp.float32))
    assert jnp.allclose(big_logits, ref_big, atol=1e-2, rtol=1e-2)

    print("KERNEL_OK")
</pallas_src>

<mosaic_0001>
module attributes {stable_mosaic.version = 11 : i64} {
  func.func @_resblock_chain_kernel(%arg0: i32, %arg1: memref<16x128xbf16, #tpu.memory_space<vmem>>, %arg2: memref<1x2x128x128xbf16, #tpu.memory_space<vmem>>, %arg3: memref<1x2x1x128xf32, #tpu.memory_space<vmem>>, %arg4: memref<1x16x128xbf16, #tpu.memory_space<vmem>>) attributes {dimension_semantics = [#tpu.dimension_semantics<parallel>], iteration_bounds = array<i64: 3>, scalar_prefetch = 0 : i64, scratch_operands = 0 : i64, tpu.core_type = #tpu.core_type<tc>, window_params = [{pipeline_mode = #tpu.pipeline_mode<synchronous>, transform_indices = @transform_0, window_bounds = array<i64: 16, 128>}, {transform_indices = @transform_1, window_bounds = array<i64: 1, 2, 128, 128>}, {transform_indices = @transform_2, window_bounds = array<i64: 1, 2, 1, 128>}, {transform_indices = @transform_3, window_bounds = array<i64: 1, 16, 128>}]} {
    %c0 = arith.constant 0 : index
    %c0_0 = arith.constant 0 : index
    %0 = vector.load %arg1[%c0, %c0_0] : memref<16x128xbf16, #tpu.memory_space<vmem>>, vector<16x128xbf16>
    %1 = arith.extf %0 : vector<16x128xbf16> to vector<16x128xf32>
    %2 = arith.truncf %1 : vector<16x128xf32> to vector<16x128xbf16>
    %c0_1 = arith.constant 0 : index
    %c0_2 = arith.constant 0 : index
    %c0_3 = arith.constant 0 : index
    %c0_4 = arith.constant 0 : index
    %3 = vector.load %arg2[%c0_1, %c0_2, %c0_3, %c0_4] : memref<1x2x128x128xbf16, #tpu.memory_space<vmem>>, vector<1x1x128x128xbf16>
    %4 = vector.shape_cast %3 : vector<1x1x128x128xbf16> to vector<128x128xbf16>
    %cst = arith.constant dense<0.000000e+00> : vector<16x128xf32>
    %5 = tpu.matmul %2, %4, %cst {dimension_numbers = #tpu.dot_dimension_numbers<[1], [0], [0], [1], [0, 0, 1, 1], [], []>} : vector<16x128xbf16>, vector<128x128xbf16>, vector<16x128xf32> -> vector<16x128xf32>
    %c0_5 = arith.constant 0 : index
    %c0_6 = arith.constant 0 : index
    %c0_7 = arith.constant 0 : index
    %c0_8 = arith.constant 0 : index
    %6 = vector.load %arg3[%c0_5, %c0_6, %c0_7, %c0_8] : memref<1x2x1x128xf32, #tpu.memory_space<vmem>>, vector<1x1x1x128xf32>
    %7 = vector.shape_cast %6 : vector<1x1x1x128xf32> to vector<1x128xf32>
    %8 = vector.broadcast %7 : vector<1x128xf32> to vector<16x128xf32>
    %9 = arith.addf %5, %8 : vector<16x128xf32>
    %10 = arith.negf %9 : vector<16x128xf32>
    %11 = math.exp %10 : vector<16x128xf32>
    %cst_9 = arith.constant 1.000000e+00 : f32
    %12 = vector.broadcast %cst_9 : f32 to vector<16x128xf32>
    %13 = arith.addf %12, %11 : vector<16x128xf32>
    %14 = arith.divf %12, %13 : vector<16x128xf32>
    %15 = arith.mulf %9, %14 : vector<16x128xf32>
    %16 = arith.addf %1, %15 : vector<16x128xf32>
    %17 = arith.truncf %16 : vector<16x128xf32> to vector<16x128xbf16>
    %c0_10 = arith.constant 0 : index
    %c1 = arith.constant 1 : index
    %c0_11 = arith.constant 0 : index
    %c0_12 = arith.constant 0 : index
    %18 = vector.load %arg2[%c0_10, %c1, %c0_11, %c0_12] : memref<1x2x128x128xbf16, #tpu.memory_space<vmem>>, vector<1x1x128x128xbf16>
    %19 = vector.shape_cast %18 : vector<1x1x128x128xbf16> to vector<128x128xbf16>
    %cst_13 = arith.constant dense<0.000000e+00> : vector<16x128xf32>
    %20 = tpu.matmul %17, %19, %cst_13 {dimension_numbers = #tpu.dot_dimension_numbers<[1], [0], [0], [1], [0, 0, 1, 1], [], []>} : vector<16x128xbf16>, vector<128x128xbf16>, vector<16x128xf32> -> vector<16x128xf32>
    %c0_14 = arith.constant 0 : index
    %c1_15 = arith.constant 1 : index
    %c0_16 = arith.constant 0 : index
    %c0_17 = arith.constant 0 : index
    %21 = vector.load %arg3[%c0_14, %c1_15, %c0_16, %c0_17] : memref<1x2x1x128xf32, #tpu.memory_space<vmem>>, vector<1x1x1x128xf32>
    %22 = vector.shape_cast %21 : vector<1x1x1x128xf32> to vector<1x128xf32>
    %23 = vector.broadcast %22 : vector<1x128xf32> to vector<16x128xf32>
    %24 = arith.addf %20, %23 : vector<16x128xf32>
    %25 = arith.negf %24 : vector<16x128xf32>
    %26 = math.exp %25 : vector<16x128xf32>
    %cst_18 = arith.constant 1.000000e+00 : f32
    %27 = vector.broadcast %cst_18 : f32 to vector<16x128xf32>
    %28 = arith.addf %27, %26 : vector<16x128xf32>
    %29 = arith.divf %27, %28 : vector<16x128xf32>
    %30 = arith.mulf %24, %29 : vector<16x128xf32>
    %31 = arith.addf %16, %30 : vector<16x128xf32>
    %32 = arith.truncf %31 : vector<16x128xf32> to vector<16x128xbf16>
    %c0_19 = arith.constant 0 : index
    %c0_20 = arith.constant 0 : index
    %c0_21 = arith.constant 0 : index
    %33 = vector.load %arg4[%c0_19, %c0_20, %c0_21] : memref<1x16x128xbf16, #tpu.memory_space<vmem>>, vector<1x16x128xbf16>
    %34 = vector.shape_cast %33 : vector<1x16x128xbf16> to vector<16x128xbf16>
    %35 = vector.shape_cast %32 : vector<16x128xbf16> to vector<1x16x128xbf16>
    tpu.vector_store %arg4[%c0_19, %c0_20, %c0_21], %35 {strides = array<i32>} : memref<1x16x128xbf16, #tpu.memory_space<vmem>>, vector<1x16x128xbf16>,
    return
  }
  func.func @transform_0(%arg0: i32) -> (i32, i32) {
    %c0_i32 = arith.constant 0 : i32
    %c0_i32_0 = arith.constant 0 : i32
    %c0_i32_1 = arith.constant 0 : i32
    return %c0_i32, %c0_i32_0 : i32, i32
  }
  func.func @transform_1(%arg0: i32) -> (i32, i32, i32, i32) {
    %c0_i32 = arith.constant 0 : i32
    %c0_i32_0 = arith.constant 0 : i32
    %c0_i32_1 = arith.constant 0 : i32
    %c0_i32_2 = arith.constant 0 : i32
    return %arg0, %c0_i32, %c0_i32_0, %c0_i32_1 : i32, i32, i32, i32
  }
  func.func @transform_2(%arg0: i32) -> (i32, i32, i32, i32) {
    %c0_i32 = arith.constant 0 : i32
    %c0_i32_0 = arith.constant 0 : i32
    %c0_i32_1 = arith.constant 0 : i32
    %c0_i32_2 = arith.constant 0 : i32
    return %arg0, %c0_i32, %c0_i32_0, %c0_i32_1 : i32, i32, i32, i32
  }
  func.func @transform_3(%arg0: i32) -> (i32, i32, i32) {
    %c0_i32 = arith.constant 0 : i32
    %c0_i32_0 = arith.constant 0 : i32
    %c0_i32_1 = arith.constant 0 : i32
    return %arg0, %c0_i32, %c0_i32_0 : i32, i32, i32
  }
}

module attributes {stable_mosaic.version = 11 : i64} {
  func.func @_proj_kernel(%arg0: i32, %arg1: i32, %arg2: i32, %arg3: memref<1x16x128xbf16, #tpu.memory_space<vmem>>, %arg4: memref<1x128x256xbf16, #tpu.memory_space<vmem>>, %arg5: memref<1x16x256xf32, #tpu.memory_space<vmem>>, %arg6: memref<16x256xf32, #tpu.memory_space<vmem>>) attributes {dimension_semantics = [#tpu.dimension_semantics<parallel>, #tpu.dimension_semantics<parallel>, #tpu.dimension_semantics<arbitrary>], iteration_bounds = array<i64: 4, 1, 1>, scalar_prefetch = 0 : i64, scratch_operands = 1 : i64, tpu.core_type = #tpu.core_type<tc>, window_params = [{transform_indices = @transform_0, window_bounds = array<i64: 1, 16, 128>}, {transform_indices = @transform_1, window_bounds = array<i64: 1, 128, 256>}, {transform_indices = @transform_2, window_bounds = array<i64: 1, 16, 256>}]} {
    %c0_i32 = arith.constant 0 : i32
    %0 = arith.cmpi eq, %arg2, %c0_i32 : i32
    %1 = arith.extui %0 : i1 to i32
    %c0_i32_0 = arith.constant 0 : i32
    %2 = arith.cmpi ne, %1, %c0_i32_0 : i32
    scf.if %2 {
      %cst_12 = arith.constant 0.000000e+00 : f32
      %14 = vector.broadcast %cst_12 : f32 to vector<16x256xf32>
      %c0_13 = arith.constant 0 : index
      %c0_14 = arith.constant 0 : index
      %15 = vector.load %arg6[%c0_13, %c0_14] : memref<16x256xf32, #tpu.memory_space<vmem>>, vector<16x256xf32>
      tpu.vector_store %arg6[%c0_13, %c0_14], %14 {strides = array<i32>} : memref<16x256xf32, #tpu.memory_space<vmem>>, vector<16x256xf32>,
    } else {
    }
    %c0 = arith.constant 0 : index
    %c0_1 = arith.constant 0 : index
    %3 = vector.load %arg6[%c0, %c0_1] : memref<16x256xf32, #tpu.memory_space<vmem>>, vector<16x256xf32>
    %c0_2 = arith.constant 0 : index
    %c0_3 = arith.constant 0 : index
    %c0_4 = arith.constant 0 : index
    %4 = vector.load %arg3[%c0_2, %c0_3, %c0_4] : memref<1x16x128xbf16, #tpu.memory_space<vmem>>, vector<1x16x128xbf16>
    %5 = vector.shape_cast %4 : vector<1x16x128xbf16> to vector<16x128xbf16>
    %c0_5 = arith.constant 0 : index
    %c0_6 = arith.constant 0 : index
    %c0_7 = arith.constant 0 : index
    %6 = vector.load %arg4[%c0_5, %c0_6, %c0_7] : memref<1x128x256xbf16, #tpu.memory_space<vmem>>, vector<1x128x256xbf16>
    %7 = vector.shape_cast %6 : vector<1x128x256xbf16> to vector<128x256xbf16>
    %cst = arith.constant dense<0.000000e+00> : vector<16x256xf32>
    %8 = tpu.matmul %5, %7, %cst {dimension_numbers = #tpu.dot_dimension_numbers<[1], [0], [0], [1], [0, 0, 1, 1], [], []>} : vector<16x128xbf16>, vector<128x256xbf16>, vector<16x256xf32> -> vector<16x256xf32>
    %9 = arith.addf %3, %8 : vector<16x256xf32>
    %c0_8 = arith.constant 0 : index
    %c0_9 = arith.constant 0 : index
    %10 = vector.load %arg6[%c0_8, %c0_9] : memref<16x256xf32, #tpu.memory_space<vmem>>, vector<16x256xf32>
    tpu.vector_store %arg6[%c0_8, %c0_9], %9 {strides = array<i32>} : memref<16x256xf32, #tpu.memory_space<vmem>>, vector<16x256xf32>,
    %c0_i32_10 = arith.constant 0 : i32
    %11 = arith.cmpi eq, %arg2, %c0_i32_10 : i32
    %12 = arith.extui %11 : i1 to i32
    %c0_i32_11 = arith.constant 0 : i32
    %13 = arith.cmpi ne, %12, %c0_i32_11 : i32
    scf.if %13 {
      %c0_12 = arith.constant 0 : index
      %c0_13 = arith.constant 0 : index
      %14 = vector.load %arg6[%c0_12, %c0_13] : memref<16x256xf32, #tpu.memory_space<vmem>>, vector<16x256xf32>
      %c0_14 = arith.constant 0 : index
      %c0_15 = arith.constant 0 : index
      %c0_16 = arith.constant 0 : index
      %15 = vector.load %arg5[%c0_14, %c0_15, %c0_16] : memref<1x16x256xf32, #tpu.memory_space<vmem>>, vector<1x16x256xf32>
      %16 = vector.shape_cast %15 : vector<1x16x256xf32> to vector<16x256xf32>
      %17 = vector.shape_cast %14 : vector<16x256xf32> to vector<1x16x256xf32>
      tpu.vector_store %arg5[%c0_14, %c0_15, %c0_16], %17 {strides = array<i32>} : memref<1x16x256xf32, #tpu.memory_space<vmem>>, vector<1x16x256xf32>,
    } else {
    }
    return
  }
  func.func @transform_0(%arg0: i32, %arg1: i32, %arg2: i32) -> (i32, i32, i32) {
    %c0_i32 = arith.constant 0 : i32
    %c0_i32_0 = arith.constant 0 : i32
    return %arg0, %c0_i32, %arg2 : i32, i32, i32
  }
  func.func @transform_1(%arg0: i32, %arg1: i32, %arg2: i32) -> (i32, i32, i32) {
    %c0_i32 = arith.constant 0 : i32
    return %arg0, %arg2, %arg1 : i32, i32, i32
  }
  func.func @transform_2(%arg0: i32, %arg1: i32, %arg2: i32) -> (i32, i32, i32) {
    %c0_i32 = arith.constant 0 : i32
    %c0_i32_0 = arith.constant 0 : i32
    return %arg0, %c0_i32, %arg1 : i32, i32, i32
  }
}

</mosaic_0001>

<bundles_post_ra>
// kernel: medusa_head_v1_forward.3
= control target key start
LH: loop header
LB: loop body
LE: loop exit
PB: predicated region body
PF: predicated region fallthrough
CT: control target
= control target key end

     0   :  { %7 = vsyncpa [#allocation4], 0  ;;  %s903_s0 = inlined_call_operand.vmem [shape: bf16[4,16,128], index: 0, kind: input, shape index: {}]   ;;  %s904_s1 = inlined_call_operand.hbm [shape: bf16[4,128,256], index: 1, kind: input, shape index: {}]   ;;  %s905_s2 = inlined_call_operand.vmem [shape: f32[4,16,256], index: 2, kind: output, shape index: {}]  }
   0x1   :  { %9 = vsyncpa [#allocation4 + $0x1], 0  ;;  %s778_s9 = smov 0   ;;  %s780_s10 = smov 0  }
   0x2   :  { %s782_s11 = smov 0   ;;  %s784_s12 = smov 0  }
   0x3   :  { %s786_s13 = smov 0   ;;  %s788_s14 = smov 0  }
   0x4 LB: > { %s519_s15 = sadd.s32 4294967295, %s759_s14   ;;  %s34_s16 = sadd.s32 1, %s755_s13  ;;  %s759_s14 = sphi %s788_s14, %s15_s14   ;;  %s755_s13 = sphi %s786_s13, %s912_s13   ;;  %s751_s12 = sphi %s784_s12, %s911_s12   ;;  %s747_s11 = sphi %s782_s11, %s910_s11   ;;  %s743_s10 = sphi %s780_s10, %s909_s10   ;;  %s739_s9 = sphi %s778_s9, %s908_s9  }
   0x5   : > { %p36_p0 = scmp.ge.s32.totalorder %s34_s16, 4  ;;  %s73_s17 = sadd.s32 1, %s747_s11 }
   0x6   : > { %p80_p1 = scmp.ne.s32.totalorder %s747_s11, %s743_s10  ;;  %p81_p2 = scmp.eq.s32.totalorder %s759_s14, 0 }
   0x7   : > { %s914_s16 = smov (%p36_p0, %s34_s16), 0  ;;  %p86_p4 = scmp.ne.s32.totalorder %s743_s10, %s739_s9 }
   0x8   : > { %p814_p3 = por %p81_p2, %p80_p1  ;;  %s66_s19 = ssub.s32 %s755_s13, %s914_s16 }
   0x9   : > { %p87_p5 = scmp.eq.s32.totalorder %s519_s15, 0  ;;  %p71_p6 = scmp.eq.s32.totalorder %s66_s19, 0 }
   0xa   : > { %p628_p8 = scmp.lt.s32.totalorder %s759_s14, 4  ;;  %s149_s22 = sand.u32 1, %s747_s11  }
   0xb   : > { %p821_p7 = por %p87_p5, %p86_p4  ;;  %s602_s23 = sshll.u32 %s755_s13, 7 }
   0xc   : > { %s827_s21 = scalar_select %p71_p6, %s747_s11, %s73_s17  }
   0xd   : > { %s523_s24 = sshll.u32 %s149_s22, 7  ;;  %s163_s27 = scalar_lea.hbm %s904_s1, %s602_s23 }
   0xe   : > { %s164_s28 = sshll.u32 %s163_s27, 4  ;;  %s153_s29 = scalar_lea.vmem [#allocation3], %s523_s24  ;;  %s165_s28 = int_to_ptr.hbm [resolvable:$true] %s164_s28 }
   0xf   : > { %s166_s30 = sshll.u32 %s153_s29, 4  ;;  %p625_p9 = pnand %p628_p8, %p814_p3  ;;  %s167_s30 = int_to_ptr.vmem [resolvable:$true] %s166_s30 }
  0x10   : > { %p526_p10 = scmp.ge.s32.totalorder %s759_s14, 1  ;;  %p174_p11 = scmp.lt.s32.totalorder %s759_s14, 5 }
  0x11   : > { %s150_s3 = scalar_lea.sflag [#allocation4], %s149_s22  ;;  %s761_s4 = smov 128  }
  0x12   : > { %s762_s5 = smov 8   ;;  %p175_p12 = pnand %p526_p10, %p174_p11 }
  0x13   : > { %627 = dma.hbm_to_vmem [thread:$0]  (!%p625_p9), %s165_s28, 2048, %s167_s30, %s150_s3, %s761_s4, %s761_s4, %s762_s5  }
  0x14   : > { %178 = sbr.rel (%p175_p12) target bundleno = 196 (0xc4), region = 28  ;;  %s180_s6 = sand.u32 (!%p175_p12), 1, %s743_s10  }
  0x15   : > { %s527_s7 = sshll.u32 (!%p175_p12), %s180_s6, 7  ;;  %s181_s8 = scalar_lea.sflag (!%p175_p12), [#allocation4], %s180_s6 }
  0x16   : > { %s839_s9 = scalar_lea.vmem (!%p175_p12), [#allocation3], %s527_s7 }
  0x19   : > { %734 = dma.done.wait (%p821_p7), %s181_s8, 2048  }
  0x1a   : > { %736 = vsyncadd (%p821_p7), %s181_s8, 4294965248  ;;  %v594_v0 = vld [vmem:[%s839_s9 + $0x70] sm:$0xf]  ;;  %v621_v1 = vld [vmem:[%s839_s9 + $0x74] sm:$0xf0]  ;;  %p218_p13 = scmp.lt.s32.totalorder %s751_s12, 3 }
  0x1b   : > { %v620_v2 = vld [vmem:[%s839_s9 + $0x74] sm:$0xf]  ;;  %v595_v3 = vor.u32 %v621_v1, %v594_v0  ;;  %v596_v4 = vld [vmem:[%s839_s9 + $0x78] sm:$0xf0]  ;;  %v586_v5 = vld [vmem:[%s839_s9 + $0x60] sm:$0xf] }
  0x1c   : > { %v619_v6 = vld [vmem:[%s839_s9 + $0x64] sm:$0xf0]  ;;  %v599_v7 = vor.u32 %v620_v2, %v596_v4  ;;  %v618_v8 = vld [vmem:[%s839_s9 + $0x64] sm:$0xf]  ;;  %v588_v9 = vld [vmem:[%s839_s9 + $0x68] sm:$0xf0] }
  0x1d   : > { %354 = vmatpush.bf16.msra.mxu0 %v595_v3  ;;  %v587_v10 = vor.u32 %v619_v6, %v586_v5  ;;  %v591_v11 = vor.u32 %v618_v8, %v588_v9  ;;  %v578_v12 = vld [vmem:[%s839_s9 + $0x50] sm:$0xf]  ;;  %v617_v13 = vld [vmem:[%s839_s9 + $0x54] sm:$0xf0]  ;;  %v616_v14 = vld [vmem:[%s839_s9 + $0x54] sm:$0xf] }
  0x1e   : > { %368 = vmatpush.bf16.msra.mxu1 %v599_v7  ;;  %v580_v15 = vld [vmem:[%s839_s9 + $0x58] sm:$0xf0]  ;;  %v579_v16 = vor.u32 %v617_v13, %v578_v12  ;;  %v570_v18 = vld [vmem:[%s839_s9 + $0x40] sm:$0xf]  ;;  %v615_v19 = vld [vmem:[%s839_s9 + $0x44] sm:$0xf0] }
  0x1f   : > { %v583_v17 = vor.u32 %v616_v14, %v580_v15  ;;  %v614_v20 = vld [vmem:[%s839_s9 + $0x44] sm:$0xf]  ;;  %v572_v21 = vld [vmem:[%s839_s9 + $0x48] sm:$0xf0]  ;;  %v571_v22 = vor.u32 %v615_v19, %v570_v18  ;;  %v562_v24 = vld [vmem:[%s839_s9 + $0x30] sm:$0xf] }
  0x20   : > { %v575_v23 = vor.u32 %v614_v20, %v572_v21  ;;  %v613_v25 = vld [vmem:[%s839_s9 + $0x34] sm:$0xf0]  ;;  %v612_v26 = vld [vmem:[%s839_s9 + $0x34] sm:$0xf]  ;;  %v564_v27 = vld [vmem:[%s839_s9 + $0x38] sm:$0xf0] }
  0x21   : > { %355 = vmatpush.bf16.msra.mxu0 %v587_v10  ;;  %v563_v28 = vor.u32 %v613_v25, %v562_v24  ;;  %v567_v29 = vor.u32 %v612_v26, %v564_v27  ;;  %v554_v30 = vld [vmem:[%s839_s9 + $0x20] sm:$0xf]  ;;  %v611_v31 = vld [vmem:[%s839_s9 + $0x24] sm:$0xf0]  ;;  %v610_v32 = vld [vmem:[%s839_s9 + $0x24] sm:$0xf] }
  0x22   : > { %369 = vmatpush.bf16.msra.mxu1 %v591_v11  ;;  %v556_v33 = vld [vmem:[%s839_s9 + $0x28] sm:$0xf0]  ;;  %v555_v34 = vor.u32 %v611_v31, %v554_v30  ;;  %v546_v36 = vld [vmem:[%s839_s9 + $0x10] sm:$0xf]  ;;  %v609_v37 = vld [vmem:[%s839_s9 + $0x14] sm:$0xf0] }
  0x23   : > { %v559_v35 = vor.u32 %v610_v32, %v556_v33  ;;  %s916_s12 = smov (!%p218_p13, %s751_s12), 3  ;;  %v608_v38 = vld [vmem:[%s839_s9 + $0x14] sm:$0xf]  ;;  %v548_v39 = vld [vmem:[%s839_s9 + $0x18] sm:$0xf0]  ;;  %v547_v40 = vor.u32 %v609_v37, %v546_v36 }
  0x24   : > { %v551_v41 = vor.u32 %v608_v38, %v548_v39  ;;  %v538_v42 = vld [vmem:[%s839_s9] sm:$0xf]  ;;  %v607_v43 = vld [vmem:[%s839_s9 + $0x4] sm:$0xf0]  ;;  %s603_s15 = sshll.u32 %s916_s12, 3  ;;  %s604_s20 = sshll.u32 %s916_s12, 5 }
  0x25   : > { %356 = vmatpush.bf16.msra.mxu0 %v579_v16  ;;  %v606_v44 = vld [vmem:[%s839_s9 + $0x4] sm:$0xf]  ;;  %v540_v45 = vld [vmem:[%s839_s9 + $0x8] sm:$0xf0]  ;;  %v539_v46 = vor.u32 %v607_v43, %v538_v42  ;;  %s225_s19 = scalar_lea.vmem %s903_s0, %s603_s15  ;;  %s236_s24 = scalar_lea.vmem %s905_s2, %s604_s20 }
  0x26   : > { %370 = vmatpush.bf16.msra.mxu1 %v583_v17  ;;  %v543_v47 = vor.u32 %v606_v44, %v540_v45  ;;  %v605_v48 = vld [vmem:[%s225_s19] sm:$0xff] }
  0x29   : > { %357 = vmatpush.bf16.msra.mxu0 %v571_v22 }
  0x2a   : > { %371 = vmatpush.bf16.msra.mxu1 %v575_v23 }
  0x2d   : > { %358 = vmatpush.bf16.msra.mxu0 %v563_v28 }
  0x2e   : > { %372 = vmatpush.bf16.msra.mxu1 %v567_v29 }
  0x31   : > { %359 = vmatpush.bf16.msra.mxu0 %v555_v34 }
  0x32   : > { %373 = vmatpush.bf16.msra.mxu1 %v559_v35 }
  0x35   : > { %360 = vmatpush.bf16.msra.mxu0 %v547_v40 }
  0x36   : > { %374 = vmatpush.bf16.msra.mxu1 %v551_v41 }
  0x39   : > { %361 = vmatpush.bf16.msra.mxu0 %v539_v46 }
  0x3a   : > { %375 = vmatpush.bf16.msra.mxu1 %v543_v47 }
  0x3c   : > { %362 = vmatmul.bf16.vlgmr.msra.gmra.mxu0 %v605_v48 }
  0x3d   : > { %376 = vmatmul.bf16.vlgmr.msra.gmra.mxu1 %v605_v48 }
  0xb9   : > { %v363_v49 = vpop.f32.mrf.mxu0 }
  0xba   : > { %397 = vst [vmem:[%s236_s24] sm:$0xff] %v363_v49  ;;  %v377_v50 = vpop.f32.mrf.mxu1 }
  0xbb   : > { %398 = vst [vmem:[%s236_s24 + $0x8] sm:$0xff] %v377_v50 }
  0xc1   : > { %v365_v51 = vpop.f32.mrf.mxu0 }
  0xc2   : > { %399 = vst [vmem:[%s236_s24 + $0x10] sm:$0xff] %v365_v51  ;;  %v379_v52 = vpop.f32.mrf.mxu1 }
  0xc3   : > { %400 = vst [vmem:[%s236_s24 + $0x18] sm:$0xff] %v379_v52 }
  0xc4 PF: > { %s15_s14 = sadd.s32 1, %s759_s14   ;;  %s908_s9 = smov %s743_s10 }
  0xc5   : > { %p12_p0 = scmp.ge.s32.totalorder %s15_s14, 6   ;;  %s909_s10 = smov %s747_s11 }
  0xc6   : > { %s910_s11 = smov %s827_s21  ;;  %s911_s12 = smov %s755_s13 }
  0xc7   : > { %s912_s13 = smov %s914_s16  ;;  %14 = sbr.rel (!%p12_p0) target bundleno = 4 (0x4), region = 79 }
  0xcc   :  { %431 = vsyncpa [#allocation4], 1 }
  0xcd   :  { %433 = vsyncpa [#allocation4 + $0x1], 1 }

// kernel: medusa_head_v1_forward.2
= control target key start
LH: loop header
LB: loop body
LE: loop exit
PB: predicated region body
PF: predicated region fallthrough
CT: control target
= control target key end

     0   :  { %8 = vsyncpa [#allocation3], 0  ;;  %s954_s0 = inlined_call_operand.vmem [shape: bf16[16,128], index: 0, kind: input, shape index: {}]   ;;  %s955_s1 = inlined_call_operand.hbm [shape: bf16[3,2,128,128], index: 1, kind: input, shape index: {}]   ;;  %s956_s2 = inlined_call_operand.vmem [shape: f32[3,2,1,128], index: 2, kind: input, shape index: {}]   ;;  %s957_s3 = inlined_call_operand.vmem [shape: bf16[3,16,128], index: 3, kind: output, shape index: {}]  }
   0x1   :  { %10 = vsyncpa [#allocation3 + $0x1], 0  ;;  %s827_s12 = smov 0   ;;  %s829_s13 = smov 0  }
   0x2   :  { %s831_s14 = smov 0   ;;  %s833_s15 = smov 0  }
   0x3 LB: > { %s846_s16 = sadd.s32 4294967295, %s803_s15   ;;  %s849_s17 = sadd.s32 1, %s803_s15   ;;  %s803_s15 = sphi %s833_s15, %s964_s15   ;;  %s799_s14 = sphi %s831_s14, %s963_s14   ;;  %s795_s13 = sphi %s829_s13, %s962_s13   ;;  %s791_s12 = sphi %s827_s12, %s961_s12  }
   0x4   : > { %s41_s18 = ssub.s32 %s803_s15, %s849_s17  ;;  %s44_s19 = sadd.s32 1, %s799_s14 }
   0x5   : > { %p42_p0 = scmp.eq.s32.totalorder %s41_s18, 0  ;;  %p51_p1 = scmp.ne.s32.totalorder %s799_s14, %s795_s13 }
   0x6   : > { %p52_p2 = scmp.eq.s32.totalorder %s803_s15, 0  ;;  %p57_p3 = scmp.ne.s32.totalorder %s795_s13, %s791_s12 }
   0x7   : > { %s859_s20 = scalar_select %p42_p0, %s799_s14, %s44_s19  }
   0x8   : > { %p861_p4 = por %p52_p2, %p51_p1  ;;  %p58_p5 = scmp.eq.s32.totalorder %s846_s16, 0 }
   0x9   : > { %p686_p6 = scmp.lt.s32.totalorder %s803_s15, 3  ;;  %s136_s23 = sand.u32 1, %s799_s14  }
   0xa   : > { %p867_p7 = por %p58_p5, %p57_p3  ;;  %s557_s24 = sshll.u32 %s136_s23, 7 }
   0xb   : > { %s656_s25 = sshll.u32 %s803_s15, 7  ;;  %s140_s29 = scalar_lea.vmem [#allocation2], %s557_s24 }
   0xc   : > { %s145_s28 = scalar_lea.hbm %s955_s1, %s656_s25  ;;  %s148_s30 = sshll.u32 %s140_s29, 4  ;;  %s149_s30 = int_to_ptr.vmem [resolvable:$true] %s148_s30 }
   0xd   : > { %s146_s4 = sshll.u32 %s145_s28, 4  ;;  %p878_p8 = pnand %p686_p6, %p861_p4  ;;  %s147_s4 = int_to_ptr.hbm [resolvable:$true] %s146_s4 }
   0xe   : > { %p560_p9 = scmp.ge.s32.totalorder %s803_s15, 1  ;;  %s137_s6 = scalar_lea.sflag [#allocation3], %s136_s23 }
   0xf   : > { %s739_s7 = sshra.s32 %s147_s4, 4  ;;  %p743_p11 = pneg %p878_p8  ;;  %s740_s7 = int_to_ptr.hbm [resolvable:$true] %s739_s7 }
  0x10   : > { %s741_s8 = scalar_lea.hbm %s740_s7, 128  ;;  %s746_s11 = scalar_lea.hbm %s955_s1, 384 }
  0x11   : > { %p742_p10 = scmp.ne.s32.totalorder %s740_s7, %s741_s8  ;;  %p747_p0 = scmp.lt.s32.totalorder %s740_s7, %s955_s1 }
  0x12   : > { %p748_p1 = scmp.lt.s32.totalorder %s746_s11, %s741_s8 }
  0x13   : > { %p744_p12 = pnand %p743_p11, %p742_p10 }
  0x14   : > { %p749_p2 = por %p748_p1, %p747_p0 }
  0x15   : > { %p745_p13 = pneg %p744_p12 }
  0x17   : > { %p750_p3 = pnand %p749_p2, %p745_p13 }
  0x19   : > { %753 = shalt.err (!%p750_p3)
}
  0x1a   : > { %s805_s19 = smov 64   ;;  %s806_s21 = smov 4  }
  0x1b   : > { %685 = dma.hbm_to_vmem [thread:$0]  (!%p878_p8), %s147_s4, 2048, %s149_s30, %s137_s6, %s805_s19, %s805_s19, %s806_s21  }
  0x1c   : > { %p163_p4 = scmp.lt.s32.totalorder %s803_s15, 4 }
  0x1e   : > { %p164_p5 = pnand %p560_p9, %p163_p4 }
  0x1f   : > { %s169_s23 = sand.u32 (!%p164_p5), 1, %s795_s13  }
  0x20   : > { %167 = sbr.rel (%p164_p5) target bundleno = 411 (0x19b), region = 32  ;;  %s561_s24 = sshll.u32 (!%p164_p5), %s169_s23, 7 }
  0x21   : > { %s170_s25 = scalar_lea.sflag (!%p164_p5), [#allocation3], %s169_s23  ;;  %s897_s26 = scalar_lea.vmem (!%p164_p5), [#allocation2], %s561_s24 }
  0x25   : > { %786 = dma.done.wait (%p867_p7), %s170_s25, 2048  }
  0x26   : > { %788 = vsyncadd (%p867_p7), %s170_s25, 4294965248  ;;  %p201_p6 = scmp.lt.s32.totalorder %s846_s16, 2  ;;  %v666_v0 = vld [vmem:[%s897_s26 + $0x38] sm:$0xff]  ;;  %v665_v1 = vld [vmem:[%s897_s26 + $0x30] sm:$0xff] }
  0x27   : > { %288 = vmatpush.bf16.msra.mxu0 %v666_v0  ;;  %v664_v2 = vld [vmem:[%s897_s26 + $0x28] sm:$0xff]  ;;  %v663_v3 = vld [vmem:[%s897_s26 + $0x20] sm:$0xff]  ;;  %v662_v4 = vld [vmem:[%s897_s26 + $0x18] sm:$0xff] }
  0x28   : > { %s966_s16 = smov (!%p201_p6, %s846_s16), 2  ;;  %v661_v5 = vld [vmem:[%s897_s26 + $0x10] sm:$0xff]  ;;  %v660_v6 = vld [vmem:[%s897_s26 + $0x8] sm:$0xff]  ;;  %v659_v7 = vld [vmem:[%s897_s26] sm:$0xff] }
  0x29   : > { %s562_s15 = sshll.u32 %s966_s16, 1  ;;  %v658_v8 = vld [vmem:[%s954_s0] sm:$0xff]  ;;  %v674_v9 = vld [vmem:[%s897_s26 + $0x78] sm:$0xff]  ;;  %v673_v10 = vld [vmem:[%s897_s26 + $0x70] sm:$0xff]  ;;  %s657_s6 = sshll.u32 %s966_s16, 3 }
  0x2a   : > { %s913_s28 = scalar_lea.vmem %s956_s2, %s562_s15  ;;  %415 = vmatpush.bf16.msra.mxu1 %v674_v9  ;;  %v672_v11 = vld [vmem:[%s897_s26 + $0x68] sm:$0xff]  ;;  %v671_v12 = vld [vmem:[%s897_s26 + $0x60] sm:$0xff]  ;;  %v670_v13 = vld [vmem:[%s897_s26 + $0x58] sm:$0xff]  ;;  %s209_s9 = scalar_lea.vmem %s957_s3, %s657_s6 }
  0x2b   : > { %289 = vmatpush.bf16.msra.mxu0 %v665_v1  ;;  %v721_v14 = vld [vmem:[%s913_s28] ss:$0 sm:$0xff]  ;;  %v669_v16 = vld [vmem:[%s897_s26 + $0x50] sm:$0xff]  ;;  %v668_v19 = vld [vmem:[%s897_s26 + $0x48] sm:$0xff] }
  0x2c   : > { %v667_v20 = vld [vmem:[%s897_s26 + $0x40] sm:$0xff] }
  0x2d   : > { %v210_v43 = vld [vmem:[%s954_s0] sm:$0xff]  }
  0x2e   : > { %416 = vmatpush.bf16.msra.mxu1 %v673_v10  ;;  %v212_v47 = vunpack.c.l.bf16 %v210_v43  ;;  %v213_v50 = vunpack.c.h.bf16 %v210_v43  ;;  %v722_v56 = vld [vmem:[%s913_s28 + $0x1] ss:$0 sm:$0xff] }
  0x2f   : > { %290 = vmatpush.bf16.msra.mxu0 %v664_v2 }
  0x32   : > { %417 = vmatpush.bf16.msra.mxu1 %v672_v11 }
  0x33   : > { %291 = vmatpush.bf16.msra.mxu0 %v663_v3 }
  0x36   : > { %418 = vmatpush.bf16.msra.mxu1 %v671_v12 }
  0x37   : > { %292 = vmatpush.bf16.msra.mxu0 %v662_v4 }
  0x3a   : > { %419 = vmatpush.bf16.msra.mxu1 %v670_v13 }
  0x3b   : > { %293 = vmatpush.bf16.msra.mxu0 %v661_v5 }
  0x3e   : > { %420 = vmatpush.bf16.msra.mxu1 %v669_v16 }
  0x3f   : > { %294 = vmatpush.bf16.msra.mxu0 %v660_v6 }
  0x42   : > { %421 = vmatpush.bf16.msra.mxu1 %v668_v19 }
  0x43   : > { %295 = vmatpush.bf16.msra.mxu0 %v659_v7 }
  0x46   : > { %296 = vmatmul.bf16.vlgmr.msra.gmra.mxu0 %v658_v8  ;;  %422 = vmatpush.bf16.msra.mxu1 %v667_v20 }
  0xc3   : > { %v297_v15 = vpop.f32.mrf.mxu0 }
  0xc4   : > { %v298_v17 = vadd.f32 %v721_v14, %v297_v15 }
  0xc6   : > { %v601_v18 = vmul.f32 -1.442695, %v298_v17 }
  0xc8   : > { %723 = vpow2.f32 %v601_v18 }
  0xcb   : > { %v299_v21 = vpop.f32.mrf.mxu0 }
  0xcc   : > { %v300_v22 = vadd.f32 %v721_v14, %v299_v21 }
  0xce   : > { %v724_v23 = vpop.eup %723  ;;  %v602_v24 = vmul.f32 -1.442695, %v300_v22 }
  0xcf   : > { %v308_v25 = vadd.f32 1.0, %v724_v23 }
  0xd0   : > { %725 = vpow2.f32 %v602_v24 }
  0xd1   : > { %727 = vrcp.f32 %v308_v25  ;;  %v321_v34 = vand.u32 2147483648, %v308_v25  ;;  %vm315_vm1 = vweird.f32 %v308_v25  ;;  %v319_v35 = vand.u32 2147483647, %v308_v25 }
  0xd3   : > { %v322_v39 = vor.u32 1.1754944e-38, %v321_v34  ;;  %vm320_vm3 = vcmp.eq.f32.partialorder %v319_v35, 8.507059e+37 }
  0xd6   : > { %v726_v26 = vpop.eup %725 }
  0xd7   : > { %v728_v27 = vpop.eup %727  ;;  %v309_v28 = vadd.f32 1.0, %v726_v26 }
  0xd8   : > { %v311_v29 = vmul.f32 %v728_v27, %v308_v25  ;;  %vm316_vm0 = vweird.f32 %v728_v27 }
  0xd9   : > { %729 = vrcp.f32 %v309_v28  ;;  %vm317_vm2 = vmor %vm315_vm1, %vm316_vm0  ;;  %v336_v40 = vand.u32 2147483648, %v309_v28  ;;  %v334_v42 = vand.u32 2147483647, %v309_v28  ;;  %vm330_vm5 = vweird.f32 %v309_v28 }
  0xda   : > { %v312_v30 = vsub.f32 1.0, %v311_v29 }
  0xdb   : > { %v337_v46 = vor.u32 1.1754944e-38, %v336_v40  ;;  %vm335_vm7 = vcmp.eq.f32.partialorder %v334_v42, 8.507059e+37 }
  0xdc   : > { %v313_v31 = vmul.f32 %v728_v27, %v312_v30 }
  0xde   : > { %v314_v32 = vadd.f32 %v728_v27, %v313_v31 }
  0xdf   : > { %v730_v33 = vpop.eup %729 }
  0xe0   : > { %v326_v36 = vmul.f32 %v730_v33, %v309_v28  ;;  %v318_v37 = vsel %vm317_vm2, %v728_v27, %v314_v32  ;;  %vm331_vm4 = vweird.f32 %v730_v33 }
  0xe1   : > { %v323_v44 = vsel %vm320_vm3, %v322_v39, %v318_v37  ;;  %vm332_vm6 = vmor %vm330_vm5, %vm331_vm4 }
  0xe2   : > { %v327_v38 = vsub.f32 1.0, %v326_v36  ;;  %v340_v48 = vmul.f32 %v323_v44, %v298_v17 }
  0xe4   : > { %v328_v41 = vmul.f32 %v730_v33, %v327_v38  ;;  %v342_v53 = vadd.f32 %v340_v48, %v212_v47 }
  0xe6   : > { %v329_v45 = vadd.f32 %v730_v33, %v328_v41 }
  0xe8   : > { %v333_v49 = vsel %vm332_vm6, %v730_v33, %v329_v45 }
  0xe9   : > { %v338_v51 = vsel %vm335_vm7, %v337_v46, %v333_v49 }
  0xea   : > { %v341_v52 = vmul.f32 %v338_v51, %v300_v22 }
  0xec   : > { %v343_v54 = vadd.f32 %v341_v52, %v213_v50 }
  0xee   : > { %v344_v55 = vpack.c.bf16 %v343_v54, %v342_v53 }
  0xf0   : > { %423 = vmatmul.bf16.vlgmr.msra.gmra.mxu1 %v344_v55 }
 0x16d   : > { %v424_v57 = vpop.f32.mrf.mxu1 }
 0x16e   : > { %v425_v58 = vadd.f32 %v722_v56, %v424_v57 }
 0x170   : > { %v652_v59 = vmul.f32 -1.442695, %v425_v58 }
 0x172   : > { %731 = vpow2.f32 %v652_v59 }
 0x175   : > { %v426_v60 = vpop.f32.mrf.mxu1 }
 0x176   : > { %v427_v61 = vadd.f32 %v722_v56, %v426_v60 }
 0x178   : > { %v732_v62 = vpop.eup %731  ;;  %v653_v63 = vmul.f32 -1.442695, %v427_v61 }
 0x179   : > { %v435_v0 = vadd.f32 1.0, %v732_v62 }
 0x17a   : > { %733 = vpow2.f32 %v653_v63 }
 0x17b   : > { %735 = vrcp.f32 %v435_v0  ;;  %v448_v9 = vand.u32 2147483648, %v435_v0  ;;  %vm442_vm9 = vweird.f32 %v435_v0  ;;  %v446_v10 = vand.u32 2147483647, %v435_v0 }
 0x17d   : > { %v449_v14 = vor.u32 1.1754944e-38, %v448_v9  ;;  %vm447_vm11 = vcmp.eq.f32.partialorder %v446_v10, 8.507059e+37 }
 0x180   : > { %v734_v1 = vpop.eup %733 }
 0x181   : > { %v736_v2 = vpop.eup %735  ;;  %v436_v3 = vadd.f32 1.0, %v734_v1 }
 0x182   : > { %v438_v4 = vmul.f32 %v736_v2, %v435_v0  ;;  %vm443_vm8 = vweird.f32 %v736_v2 }
 0x183   : > { %737 = vrcp.f32 %v436_v3  ;;  %vm444_vm10 = vmor %vm442_vm9, %vm443_vm8  ;;  %v463_v15 = vand.u32 2147483648, %v436_v3  ;;  %v461_v17 = vand.u32 2147483647, %v436_v3  ;;  %vm457_vm13 = vweird.f32 %v436_v3 }
 0x184   : > { %v439_v5 = vsub.f32 1.0, %v438_v4 }
 0x185   : > { %v464_v20 = vor.u32 1.1754944e-38, %v463_v15  ;;  %vm462_vm15 = vcmp.eq.f32.partialorder %v461_v17, 8.507059e+37 }
 0x186   : > { %v440_v6 = vmul.f32 %v736_v2, %v439_v5 }
 0x188   : > { %v441_v7 = vadd.f32 %v736_v2, %v440_v6 }
 0x189   : > { %v738_v8 = vpop.eup %737 }
 0x18a   : > { %v453_v11 = vmul.f32 %v738_v8, %v436_v3  ;;  %v445_v12 = vsel %vm444_vm10, %v736_v2, %v441_v7  ;;  %vm458_vm12 = vweird.f32 %v738_v8 }
 0x18b   : > { %v450_v18 = vsel %vm447_vm11, %v449_v14, %v445_v12  ;;  %vm459_vm14 = vmor %vm457_vm13, %vm458_vm12 }
 0x18c   : > { %v454_v13 = vsub.f32 1.0, %v453_v11  ;;  %v467_v21 = vmul.f32 %v450_v18, %v425_v58 }
 0x18e   : > { %v455_v16 = vmul.f32 %v738_v8, %v454_v13  ;;  %v469_v25 = vadd.f32 %v467_v21, %v342_v53 }
 0x190   : > { %v456_v19 = vadd.f32 %v738_v8, %v455_v16 }
 0x192   : > { %v460_v22 = vsel %vm459_vm14, %v738_v8, %v456_v19 }
 0x193   : > { %v465_v23 = vsel %vm462_vm15, %v464_v20, %v460_v22 }
 0x194   : > { %v468_v24 = vmul.f32 %v465_v23, %v427_v61 }
 0x196   : > { %v470_v26 = vadd.f32 %v468_v24, %v343_v54 }
 0x198   : > { %v678_v27 = vpack.c.bf16 %v470_v26, %v469_v25 }
 0x19a   : > { %679 = vst [vmem:[%s209_s9] sm:$0xff] %v678_v27  }
 0x19b PF: > { %p13_p7 = scmp.ge.s32.totalorder %s849_s17, 5   ;;  %s961_s12 = smov %s795_s13 }
 0x19c   : > { %s962_s13 = smov %s799_s14  ;;  %s963_s14 = smov %s859_s20 }
 0x19d   : > { %s964_s15 = smov %s849_s17  ;;  %15 = sbr.rel (!%p13_p7) target bundleno = 3 (0x3), region = 77 }
 0x1a2   :  { %496 = vsyncpa [#allocation3], 1 }
 0x1a3   :  { %498 = vsyncpa [#allocation3 + $0x1], 1 }

</bundles_post_ra>
